<compile_context>
chip_gen: v6e
topology: v6e:2x2x1
jax: 0.10.0
libtpu: 0.0.40
codegen_flags: <defaults>
</compile_context>

<pallas_src>
import jax
import jax.numpy as jnp
from jax.experimental import pallas as pl
from jax.experimental.pallas import tpu as pltpu


# ---------------- Pallas kernels ----------------

def _make_stats_kernel(tsb):
    """Fused single pass over the packed (SB, K*G, HW) view.

    Accumulates sum(x) -> (K*G, 1) and the packed Gram x @ x.T -> (K*G, K*G)
    directly into the grid-resident output blocks (constant index_map), so no
    scratch accumulators or epilogue copies are needed.
    """
    def kernel(x_ref, sx_ref, sxx_ref):
        @pl.when((pl.program_id(0) == 0) & (pl.program_id(1) == 0))
        def _():
            sx_ref[...] = jnp.zeros_like(sx_ref)
            sxx_ref[...] = jnp.zeros_like(sxx_ref)

        for t in range(tsb):                      # tsb <= 8, unrolled at trace time
            x = x_ref[t]                          # (KG, thw), input dtype (bf16 stays bf16)
            sx_ref[...] += jnp.sum(x.astype(jnp.float32), axis=1, keepdims=True)
            # Full-width MXU Gram (contraction over lanes), f32 accumulation.
            sxx_ref[...] += jax.lax.dot_general(
                x, x, (((1,), (1,)), ((), ())),
                preferred_element_type=jnp.float32)
    return kernel


def _make_whiten_kernel(tsb):
    """y = blockdiag(wm) @ (x - mean), fused per-channel affine.

    wm_blk = kron(I_K, wm) is a single (K*G, K*G) operand: one near-full-width
    MXU matmul per packed row instead of K tiny (G,G)x(G,thw) matmuls, and no
    (tsb, G, G) broadcast of wm.
    """
    def kernel(x_ref, mean_ref, wm_ref, w_ref, b_ref, y_ref):
        wm = wm_ref[...]                          # (KG, KG), MXU compute dtype
        mean = mean_ref[...]                      # (KG, 1) f32
        for t in range(tsb):
            xc = (x_ref[t].astype(jnp.float32) - mean).astype(wm.dtype)
            y = jax.lax.dot_general(wm, xc, (((1,), (0,)), ((), ())),
                                    preferred_element_type=jnp.float32)
            y_ref[t] = (y * w_ref[t] + b_ref[t]).astype(y_ref.dtype)
    return kernel


# ---------------- helpers ----------------

def _largest_divisor(n, cap, multiple=1):
    """Largest divisor of n that is <= cap and a multiple of `multiple` (0 if none)."""
    best = 0
    d = 1
    while d * d <= n:
        if n % d == 0:
            for c in (d, n // d):
                if c <= cap and c % multiple == 0 and c > best:
                    best = c
        d += 1
    return best


def _tpu_vmem_bytes():
    try:
        return int(pltpu.get_tpu_info().vmem_capacity_bytes)
    except Exception:
        return 64 * 1024 * 1024                   # conservative default (v7x)


def _mxu_width():
    """MXU contraction/output width: 128 on <=v5, 256 on v6e/v7x."""
    try:
        kind = jax.devices()[0].device_kind.lower()
    except Exception:
        return 256
    if any(t in kind for t in ("v2", "v3", "v4", "v5")):
        return 128
    return 256


# ---------------- wrapper ----------------

def dbn_forward(x, weight, bias, *, num_groups, eps=1e-5, momentum=0.1,
                running_mean=None, running_projection=None,
                target_block_bytes=None):
    N, C, H, W = x.shape
    G = num_groups
    assert C % G == 0
    Cg = C // G
    B3 = N * Cg                     # leading dim of the transpose-free view
    HW = H * W
    M = B3 * HW                     # elements per group

    # ---- generation-aware VMEM budget / block-size target -------------------
    vmem_cap = _tpu_vmem_bytes()
    vmem_budget = min(vmem_cap * 3 // 4, 96 * 1024 * 1024)   # ~48 MiB on v7x, ~96 MiB on v5e/v6e
    if target_block_bytes is None:
        target_block_bytes = (8 * 1024 * 1024 if vmem_budget >= 64 * 1024 * 1024
                              else 4 * 1024 * 1024)
    target_block_bytes = min(target_block_bytes, vmem_budget // 6)  # headroom for double buffers

    # ---- MXU-shape fix: pack K consecutive batch rows onto the sublane axis --
    # (N,C,H,W) -> (B3, G, HW) -> (SB, K*G, HW): all row-major merges, free.
    K = max(1, _largest_divisor(B3, max(1, _mxu_width() // G)))
    KG = K * G
    SB = B3 // K
    xp = x.reshape(SB, KG, HW)

    # Compact per-(row, group) affine tables; channel c = (b3 % Cg)*G + g.
    w_pack = jnp.tile(weight.reshape(Cg, G).astype(jnp.float32), (N, 1)).reshape(SB, KG, 1)
    b_pack = jnp.tile(bias.reshape(Cg, G).astype(jnp.float32), (N, 1)).reshape(SB, KG, 1)

    # ---- tile sizing ---------------------------------------------------------
    elt = jnp.dtype(x.dtype).itemsize
    if KG * HW * elt <= target_block_bytes:
        thw = HW
    else:
        thw = _largest_divisor(HW, max(1, target_block_bytes // (KG * elt)), multiple=128)
        if thw == 0:
            # TODO(synk): pad HW to a multiple of 128 instead of falling back to a
            # possibly oversized full-row block (vmem_limit below stays clamped).
            thw = HW
    tsb_cap = min(8, max(1, target_block_bytes // (KG * thw * elt)))
    tsb = max(1, _largest_divisor(SB, tsb_cap))
    grid = (SB // tsb, HW // thw)
    block_bytes = tsb * KG * thw * elt
    vmem_limit = int(min(vmem_budget,
                         max(32 * 1024 * 1024, 6 * block_bytes + 4 * KG * KG * 4)))

    # ---- kernel 1: fused sum(x) / packed Gram over the whole tensor ----------
    # Shared grid-resident accumulator => both axes must stay "arbitrary" (a
    # "parallel" axis would race across v7x's two TensorCores).  After the
    # packed-Gram fix this pass is HBM-bound on a single TC, so per-core partial
    # (KG,KG) outputs would mostly add HBM writeback; revisit only if profiling
    # shows the stats pass MXU-bound on v7x.
    sx_p, sxx_p = pl.pallas_call(
        _make_stats_kernel(tsb),
        out_shape=(jax.ShapeDtypeStruct((KG, 1), jnp.float32),
                   jax.ShapeDtypeStruct((KG, KG), jnp.float32)),
        grid_spec=pltpu.PrefetchScalarGridSpec(
            num_scalar_prefetch=0,
            grid=grid,
            in_specs=[pl.BlockSpec((tsb, KG, thw), lambda i, j: (i, 0, j))],
            out_specs=[pl.BlockSpec((KG, 1), lambda i, j: (0, 0)),
                       pl.BlockSpec((KG, KG), lambda i, j: (0, 0))],
        ),
        compiler_params=pltpu.CompilerParams(
            dimension_semantics=("arbitrary", "arbitrary"),
            vmem_limit_bytes=vmem_limit),
    )(xp)

    # ---- tiny (G,G) math in plain JAX ----------------------------------------
    inv_m = 1.0 / M
    mean = sx_p.reshape(K, G, 1).sum(axis=0) * inv_m                          # (G, 1)
    # K diagonal GxG blocks of the packed Gram (off-diagonal blocks are the
    # redundant MACs we traded for full MXU width).
    gram = jnp.diagonal(sxx_p.reshape(K, G, K, G), axis1=0, axis2=2).sum(-1)  # (G, G)
    # Single-pass covariance E[xx^T] - mu mu^T (f32 accumulators); fine for
    # BN-scale activations -- switch to a two-pass scheme if inputs are not.
    sigma = gram * inv_m - mean @ mean.T + eps * jnp.eye(G, dtype=jnp.float32)
    # TODO(synk): SVD/eigendecomposition of the tiny (G,G) covariance has no
    # Pallas equivalent; computed in plain JAX (sigma is symmetric PSD).
    u, s, _ = jnp.linalg.svd(sigma)
    wm = (u * jax.lax.rsqrt(s)[None, :]) @ u.T                                # (G, G)

    # Block-diagonal whitening operand + packed mean; bf16 passthrough when x is bf16.
    compute_dtype = jnp.bfloat16 if x.dtype == jnp.bfloat16 else jnp.float32
    wm_blk = jnp.kron(jnp.eye(K, dtype=jnp.float32), wm).astype(compute_dtype)  # (KG, KG)
    mean_pack = jnp.tile(mean, (K, 1))                                           # (KG, 1)

    # ---- kernel 2: whitening matmul + fused per-channel affine ---------------
    y3 = pl.pallas_call(
        _make_whiten_kernel(tsb),
        out_shape=jax.ShapeDtypeStruct((SB, KG, HW), x.dtype),
        grid_spec=pltpu.PrefetchScalarGridSpec(
            num_scalar_prefetch=0,
            grid=grid,
            in_specs=[pl.BlockSpec((tsb, KG, thw), lambda i, j: (i, 0, j)),
                      pl.BlockSpec((KG, 1), lambda i, j: (0, 0)),
                      pl.BlockSpec((KG, KG), lambda i, j: (0, 0)),
                      pl.BlockSpec((tsb, KG, 1), lambda i, j: (i, 0, 0)),
                      pl.BlockSpec((tsb, KG, 1), lambda i, j: (i, 0, 0))],
            out_specs=pl.BlockSpec((tsb, KG, thw), lambda i, j: (i, 0, j)),
        ),
        compiler_params=pltpu.CompilerParams(
            dimension_semantics=("parallel", "parallel"),
            vmem_limit_bytes=vmem_limit),
    )(xp, mean_pack, wm_blk, w_pack, b_pack)

    out = y3.reshape(N, C, H, W)      # free view back to NCHW (no transpose)

    # running-buffer updates (side effects of training-mode forward), plain JAX
    if running_mean is None:
        running_mean = jnp.zeros((G, 1), jnp.float32)
    if running_projection is None:
        running_projection = jnp.eye(G, dtype=jnp.float32)
    new_running_mean = (1.0 - momentum) * running_mean + momentum * mean
    new_running_projection = (1.0 - momentum) * running_projection + momentum * wm

    return out, new_running_mean, new_running_projection


# ---------------- demo / self-check ----------------

def _ref_dbn(x, weight, bias, G, eps=1e-5):
    """Pure-JAX training-mode forward mirroring the PyTorch DBN module."""
    N, C, H, W = x.shape
    xg = jnp.transpose(x.reshape(N * C // G, G, H, W), (1, 0, 2, 3)).reshape(G, -1)
    mean = xg.mean(1, keepdims=True)
    xc = xg - mean
    sigma = xc @ xc.T / xg.shape[1] + eps * jnp.eye(G, dtype=jnp.float32)
    u, s, _ = jnp.linalg.svd(sigma)
    wm = (u * jax.lax.rsqrt(s)[None, :]) @ u.T
    y = wm @ xc
    o = jnp.transpose(y.reshape(G, N * C // G, H, W), (1, 0, 2, 3)).reshape(N, C, H, W)
    return o * weight + bias


if __name__ == "__main__":
    base_key = jax.random.PRNGKey(0)

    def check(N, C, H, W, G, tag, **kw):
        key = jax.random.fold_in(base_key, tag)
        kx, kwt = jax.random.split(key)
        x = jax.random.normal(kx, (N, C, H, W), jnp.float32)
        # DBN.reset_parameters: weight ~ U[0,1), bias = 0; shape [1, C, 1, 1]
        weight = jax.random.uniform(kwt, (1, C, 1, 1), jnp.float32)
        bias = jnp.zeros((1, C, 1, 1), jnp.float32)
        out, rm, rp = dbn_forward(x, weight, bias, num_groups=G, **kw)
        jax.block_until_ready((out, rm, rp))
        r = _ref_dbn(x, weight, bias, G)
        assert jnp.allclose(out, r, atol=1e-4, rtol=1e-4), \
            float(jnp.max(jnp.abs(out - r)))

    # main small case (single block per kernel)
    check(4, 16, 16, 16, 8, tag=0)
    # forced small blocks: exercises accumulation over the spatial (j) grid axis
    check(4, 16, 16, 16, 8, tag=1, target_block_bytes=32 * 1024)
    # forced small blocks: exercises accumulation over the super-row (i) grid axis
    check(8, 64, 8, 8, 8, tag=2, target_block_bytes=32 * 1024)

    print("KERNEL_OK")
</pallas_src>

<mosaic_0001>
module attributes {stable_mosaic.version = 11 : i64} {
  func.func @kernel(%arg0: i32, %arg1: i32, %arg2: memref<1x64x256xf32, #tpu.memory_space<vmem>>, %arg3: memref<64x1xf32, #tpu.memory_space<vmem>>, %arg4: memref<64x64xf32, #tpu.memory_space<vmem>>) attributes {dimension_semantics = [#tpu.dimension_semantics<arbitrary>, #tpu.dimension_semantics<arbitrary>], iteration_bounds = array<i64: 1, 1>, scalar_prefetch = 0 : i64, scratch_operands = 0 : i64, tpu.core_type = #tpu.core_type<tc>, window_params = [{transform_indices = @transform_0, window_bounds = array<i64: 1, 64, 256>}, {pipeline_mode = #tpu.pipeline_mode<synchronous>, transform_indices = @transform_1, window_bounds = array<i64: 64, 1>}, {pipeline_mode = #tpu.pipeline_mode<synchronous>, transform_indices = @transform_2, window_bounds = array<i64: 64, 64>}]} {
    %c0_i32 = arith.constant 0 : i32
    %0 = arith.cmpi eq, %arg0, %c0_i32 : i32
    %c0_i32_0 = arith.constant 0 : i32
    %1 = arith.cmpi eq, %arg1, %c0_i32_0 : i32
    %2 = arith.andi %0, %1 : i1
    %3 = arith.extui %2 : i1 to i32
    %c0_i32_1 = arith.constant 0 : i32
    %4 = arith.cmpi ne, %3, %c0_i32_1 : i32
    scf.if %4 {
      %cst_13 = arith.constant 0.000000e+00 : f32
      %16 = vector.broadcast %cst_13 : f32 to vector<64x1xf32>
      %c0_14 = arith.constant 0 : index
      %c0_15 = arith.constant 0 : index
      %17 = vector.load %arg3[%c0_14, %c0_15] : memref<64x1xf32, #tpu.memory_space<vmem>>, vector<64x1xf32>
      tpu.vector_store %arg3[%c0_14, %c0_15], %16 {strides = array<i32>} : memref<64x1xf32, #tpu.memory_space<vmem>>, vector<64x1xf32>,
      %cst_16 = arith.constant 0.000000e+00 : f32
      %18 = vector.broadcast %cst_16 : f32 to vector<64x64xf32>
      %c0_17 = arith.constant 0 : index
      %c0_18 = arith.constant 0 : index
      %19 = vector.load %arg4[%c0_17, %c0_18] : memref<64x64xf32, #tpu.memory_space<vmem>>, vector<64x64xf32>
      tpu.vector_store %arg4[%c0_17, %c0_18], %18 {strides = array<i32>} : memref<64x64xf32, #tpu.memory_space<vmem>>, vector<64x64xf32>,
    } else {
    }
    %c0 = arith.constant 0 : index
    %c0_2 = arith.constant 0 : index
    %c0_3 = arith.constant 0 : index
    %5 = vector.load %arg2[%c0, %c0_2, %c0_3] : memref<1x64x256xf32, #tpu.memory_space<vmem>>, vector<1x64x256xf32>
    %6 = vector.shape_cast %5 : vector<1x64x256xf32> to vector<64x256xf32>
    %c0_4 = arith.constant 0 : index
    %c0_5 = arith.constant 0 : index
    %7 = vector.load %arg3[%c0_4, %c0_5] : memref<64x1xf32, #tpu.memory_space<vmem>>, vector<64x1xf32>
    %cst = arith.constant dense<0.000000e+00> : vector<64xf32>
    %8 = vector.multi_reduction <add>, %6, %cst [1] : vector<64x256xf32> to vector<64xf32>
    %9 = vector.shape_cast %8 : vector<64xf32> to vector<64x1xf32>
    %10 = arith.addf %7, %9 : vector<64x1xf32>
    %c0_6 = arith.constant 0 : index
    %c0_7 = arith.constant 0 : index
    %11 = vector.load %arg3[%c0_6, %c0_7] : memref<64x1xf32, #tpu.memory_space<vmem>>, vector<64x1xf32>
    tpu.vector_store %arg3[%c0_6, %c0_7], %10 {strides = array<i32>} : memref<64x1xf32, #tpu.memory_space<vmem>>, vector<64x1xf32>,
    %c0_8 = arith.constant 0 : index
    %c0_9 = arith.constant 0 : index
    %12 = vector.load %arg4[%c0_8, %c0_9] : memref<64x64xf32, #tpu.memory_space<vmem>>, vector<64x64xf32>
    %cst_10 = arith.constant dense<0.000000e+00> : vector<64x64xf32>
    %13 = tpu.matmul %6, %6, %cst_10 {dimension_numbers = #tpu.dot_dimension_numbers<[1], [1], [0], [0], [0, 0, 1, 0], [], []>} : vector<64x256xf32>, vector<64x256xf32>, vector<64x64xf32> -> vector<64x64xf32>
    %14 = arith.addf %12, %13 : vector<64x64xf32>
    %c0_11 = arith.constant 0 : index
    %c0_12 = arith.constant 0 : index
    %15 = vector.load %arg4[%c0_11, %c0_12] : memref<64x64xf32, #tpu.memory_space<vmem>>, vector<64x64xf32>
    tpu.vector_store %arg4[%c0_11, %c0_12], %14 {strides = array<i32>} : memref<64x64xf32, #tpu.memory_space<vmem>>, vector<64x64xf32>,
    return
  }
  func.func @transform_0(%arg0: i32, %arg1: i32) -> (i32, i32, i32) {
    %c0_i32 = arith.constant 0 : i32
    %c0_i32_0 = arith.constant 0 : i32
    return %arg0, %c0_i32, %arg1 : i32, i32, i32
  }
  func.func @transform_1(%arg0: i32, %arg1: i32) -> (i32, i32) {
    %c0_i32 = arith.constant 0 : i32
    %c0_i32_0 = arith.constant 0 : i32
    %c0_i32_1 = arith.constant 0 : i32
    return %c0_i32, %c0_i32_0 : i32, i32
  }
  func.func @transform_2(%arg0: i32, %arg1: i32) -> (i32, i32) {
    %c0_i32 = arith.constant 0 : i32
    %c0_i32_0 = arith.constant 0 : i32
    %c0_i32_1 = arith.constant 0 : i32
    return %c0_i32, %c0_i32_0 : i32, i32
  }
}

</mosaic_0001>

<bundles_post_ra>
// kernel: tpu_custom_call.1
= control target key start
LH: loop header
LB: loop body
LE: loop exit
PB: predicated region body
PF: predicated region fallthrough
CT: control target
= control target key end

     0   :  { %8 = vsyncpa [#allocation3], 0  ;;  %s504_s0 = inlined_call_operand.hbm [shape: f32[1,64,256], index: 0, kind: input, shape index: {}]   ;;  %s505_s1 = inlined_call_operand.vmem [shape: f32[64,1], index: 1, kind: output, shape index: {0}]   ;;  %s506_s2 = inlined_call_operand.hbm [shape: f32[64,64], index: 2, kind: output, shape index: {1}]  }
   0x1   :  { %9 = vsyncpa [#allocation4], 0  ;;  %s332_s9 = smov [#allocation2]  }
   0x2   :  { %s15_s10 = sshll.u32 %s332_s9, 4  ;;  %s16_s10 = int_to_ptr.vmem [resolvable:$true] %s15_s10 }
   0x3   :  { %s296_s11 = scalar_lea.vmem %s16_s10, 2048  ;;  %p301_p1 = scmp.lt.s32.totalorder %s16_s10, %s16_s10 }
   0x4   :  { %p297_p0 = scmp.ne.s32.totalorder %s16_s10, %s296_s11  ;;  %p302_p2 = scmp.lt.s32.totalorder %s296_s11, %s296_s11 }
   0x6   :  { %p303_p3 = por %p302_p2, %p301_p1 }
   0x8   :  { %p304_p4 = pnand %p303_p3, %p297_p0 }
   0xa   :  { %307 = shalt.err (!%p304_p4)
}
   0xb   :  { %s333_s12 = smov 256   ;;  %s334_s13 = smov 16  }
   0xc   :  { %21 = dma.hbm_to_vmem [thread:$0]  %s504_s0, 2048, %s16_s10, [#allocation3], %s333_s12, %s333_s12, %s334_s13  }
   0xd   :  { %328 = dma.done.wait [#allocation3], 2048  }
   0xe   :  { %329 = vsyncadd [#allocation3], 4294965248  ;;  %vm40_vm0 = vcmask 523264   ;;  %v335_v0 = vmov 0.0   ;;  %v373_v1 = vld [vmem:[#allocation2 + $0x78] sm:$0xff]  ;;  %v375_v2 = vld [vmem:[#allocation2 + $0x70] sm:$0xff] }
   0xf   :  { %41 = vst.msk [vmem:[#allocation5] sm:$0xff] %vm40_vm0, %v335_v0  ;;  %42 = vst.msk [vmem:[#allocation5 + $0x8] sm:$0xff] %vm40_vm0, %v335_v0  ;;  %v377_v3 = vld [vmem:[#allocation2 + $0x68] sm:$0xff]  ;;  %138 = vmatprep.subr.mxu0 %v373_v1  ;;  %265 = vmatprep.subr.mxu1 %v373_v1  ;;  %v383_v4 = vld [vmem:[#allocation2 + $0x60] sm:$0xff]  ;;  %v94_v23 = vadd.f32 %v373_v1, %v375_v2  ;;  %vm31_vm1 = vcmask 7168  }
  0x10   :  { %43 = vst.msk [vmem:[#allocation5 + $0x10] sm:$0xff] %vm40_vm0, %v335_v0  ;;  %44 = vst.msk [vmem:[#allocation5 + $0x18] sm:$0xff] %vm40_vm0, %v335_v0  ;;  %139 = vmatpush1.xpose.msra.mxu0 %v375_v2  ;;  %273 = vmatpush1.xpose.msra.mxu1 %v375_v2  ;;  %v58_v5 = vld [vmem:[#allocation2 + $0x48] sm:$0xff]  ;;  %v53_v7 = vld [vmem:[#allocation2 + $0x20] sm:$0xff]  ;;  %v91_v24 = vadd.f32 %v377_v3, %v383_v4 }
  0x11   :  { %45 = vst.msk [vmem:[#allocation5 + $0x20] sm:$0xff] %vm40_vm0, %v335_v0  ;;  %46 = vst.msk [vmem:[#allocation5 + $0x28] sm:$0xff] %vm40_vm0, %v335_v0  ;;  %140 = vmatprep.subr.mxu0 %v377_v3  ;;  %266 = vmatprep.subr.mxu1 %v377_v3  ;;  %v54_v6 = vld [vmem:[#allocation2 + $0x28] sm:$0xff]  ;;  %v60_v8 = vld [vmem:[#allocation2 + $0x58] sm:$0xff] }
  0x12   :  { %47 = vst.msk [vmem:[#allocation5 + $0x30] sm:$0xff] %vm40_vm0, %v335_v0  ;;  %48 = vst.msk [vmem:[#allocation5 + $0x38] sm:$0xff] %vm40_vm0, %v335_v0  ;;  %v50_v9 = vld [vmem:[#allocation2 + $0x8] sm:$0xff]  ;;  %206 = vmatprep.mubr.f32.mxu1 %v58_v5  ;;  %v79_v10 = vadd.f32 %v54_v6, %v53_v7  ;;  %v49_v11 = vld [vmem:[#allocation2] sm:$0xff] }
  0x13   :  { %186 = vmatprep.mubr.f32.mxu0 %v50_v9  ;;  %v59_v12 = vld [vmem:[#allocation2 + $0x50] sm:$0xff]  ;;  %v56_v13 = vld [vmem:[#allocation2 + $0x38] sm:$0xff]  ;;  %v73_v14 = vadd.f32 %v50_v9, %v49_v11  ;;  %v57_v20 = vld [vmem:[#allocation2 + $0x40] sm:$0xff]  ;;  %34 = vst.msk [vmem:[%s505_s1 + $0x10] sm:$0xff] %vm31_vm1, %v335_v0 }
  0x14   :  { %141 = vmatpush1.xpose.msra.mxu0 %v383_v4  ;;  %274 = vmatpush1.xpose.msra.mxu1 %v383_v4  ;;  %v55_v15 = vld [vmem:[#allocation2 + $0x30] sm:$0xff]  ;;  %v52_v16 = vld [vmem:[#allocation2 + $0x18] sm:$0xff]  ;;  %v88_v21 = vadd.f32 %v60_v8, %v59_v12  ;;  %v85_v22 = vadd.f32 %v58_v5, %v57_v20  ;;  %32 = vst.msk [vmem:[%s505_s1] sm:$0xff] %vm31_vm1, %v335_v0  ;;  %33 = vst.msk [vmem:[%s505_s1 + $0x8] sm:$0xff] %vm31_vm1, %v335_v0 }
  0x15   :  { %142 = vmatprep.subr.mxu0 %v60_v8  ;;  %267 = vmatprep.subr.mxu1 %v60_v8  ;;  %v51_v17 = vld [vmem:[#allocation2 + $0x10] sm:$0xff]  ;;  %v82_v18 = vadd.f32 %v56_v13, %v55_v15  ;;  %35 = vst.msk [vmem:[%s505_s1 + $0x18] sm:$0xff] %vm31_vm1, %v335_v0  ;;  %36 = vst.msk [vmem:[%s505_s1 + $0x20] sm:$0xff] %vm31_vm1, %v335_v0 }
  0x16   :  { %80 = vadd.xlane.f32.xlu1 %v79_v10  ;;  %74 = vadd.xlane.f32.xlu0 %v73_v14  ;;  %v76_v19 = vadd.f32 %v52_v16, %v51_v17  ;;  %37 = vst.msk [vmem:[%s505_s1 + $0x28] sm:$0xff] %vm31_vm1, %v335_v0  ;;  %38 = vst.msk [vmem:[%s505_s1 + $0x30] sm:$0xff] %vm31_vm1, %v335_v0  ;;  %v114_v49 = vld [vmem:[#allocation5] sm:$0xff]  ;;  %v115_v57 = vld [vmem:[#allocation5 + $0x8] sm:$0xff] }
  0x17   :  { %39 = vst.msk [vmem:[%s505_s1 + $0x38] sm:$0xff] %vm31_vm1, %v335_v0 }
  0x18   :  { %143 = vmatpush1.xpose.msra.mxu0 %v59_v12  ;;  %275 = vmatpush1.xpose.msra.mxu1 %v59_v12  ;;  %v118_v50 = vld [vmem:[#allocation5 + $0x20] sm:$0xff]  ;;  %v119_v58 = vld [vmem:[#allocation5 + $0x28] sm:$0xff] }
  0x19   :  { %144 = vmatprep.subr.mxu0 %v58_v5  ;;  %268 = vmatprep.subr.mxu1 %v58_v5  ;;  %v121_v10 = vld [vmem:[#allocation5 + $0x38] sm:$0xff] }
  0x1a   :  { %83 = vadd.xlane.f32.xlu1 %v82_v18  ;;  %77 = vadd.xlane.f32.xlu0 %v76_v19  ;;  %v67_v25 = vld [vmem:[%s505_s1 + $0x10] sm:$0xff] }
  0x1b   :  { %v65_v26 = vld [vmem:[%s505_s1] sm:$0xff]  ;;  %v66_v32 = vld [vmem:[%s505_s1 + $0x8] sm:$0xff] }
  0x1c   :  { %145 = vmatpush1.xpose.msra.mxu0 %v57_v20  ;;  %276 = vmatpush1.xpose.msra.mxu1 %v57_v20  ;;  %v68_v31 = vld [vmem:[%s505_s1 + $0x18] sm:$0xff]  ;;  %v69_v38 = vld [vmem:[%s505_s1 + $0x20] sm:$0xff] }
  0x1d   :  { %146 = vmatprep.subr.mxu0 %v56_v13  ;;  %269 = vmatprep.subr.mxu1 %v56_v13  ;;  %v70_v37 = vld [vmem:[%s505_s1 + $0x28] sm:$0xff]  ;;  %v71_v44 = vld [vmem:[%s505_s1 + $0x30] sm:$0xff] }
  0x1e   :  { %89 = vadd.xlane.f32.xlu1 %v88_v21  ;;  %86 = vadd.xlane.f32.xlu0 %v85_v22  ;;  %v72_v43 = vld [vmem:[%s505_s1 + $0x38] sm:$0xff] }
  0x20   :  { %147 = vmatpush1.xpose.msra.mxu0 %v55_v15  ;;  %277 = vmatpush1.xpose.msra.mxu1 %v55_v15 }
  0x21   :  { %148 = vmatprep.subr.mxu0 %v54_v6  ;;  %270 = vmatprep.subr.mxu1 %v54_v6 }
  0x22   :  { %95 = vadd.xlane.f32.xlu1 %v94_v23  ;;  %92 = vadd.xlane.f32.xlu0 %v91_v24 }
  0x24   :  { %149 = vmatpush1.xpose.msra.mxu0 %v53_v7  ;;  %278 = vmatpush1.xpose.msra.mxu1 %v53_v7 }
  0x25   :  { %150 = vmatprep.subr.mxu0 %v52_v16  ;;  %271 = vmatprep.subr.mxu1 %v52_v16 }
  0x28   :  { %151 = vmatpush1.xpose.msra.mxu0 %v51_v17  ;;  %279 = vmatpush1.xpose.msra.mxu1 %v51_v17 }
  0x29   :  { %152 = vmatprep.subr.mxu0 %v50_v9  ;;  %272 = vmatprep.subr.mxu1 %v50_v9  ;;  %v117_v9 = vld [vmem:[#allocation5 + $0x18] sm:$0xff] }
  0x2c   :  { %153 = vmatpush1.xpose.msra.mxu0 %v49_v11  ;;  %280 = vmatpush1.xpose.msra.mxu1 %v49_v11 }
  0x2f   :  { %187 = vmatmul.mubr.f32.vlgmr.msra.gmra.mxu0 %v49_v11  ;;  %207 = vmatmul.mubr.f32.vlgmr.msra.gmra.mxu1 %v57_v20 }
  0x30   :  { %191 = vmatprep.mubr.f32.mxu0 %v52_v16  ;;  %211 = vmatprep.mubr.f32.mxu1 %v60_v8 }
  0x33   :  { %192 = vmatmul.mubr.f32.gmra.mxu0 %v51_v17  ;;  %212 = vmatmul.mubr.f32.gmra.mxu1 %v59_v12 }
  0x34   :  { %196 = vmatprep.mubr.f32.mxu0 %v54_v6  ;;  %216 = vmatprep.mubr.f32.mxu1 %v377_v3 }
  0x37   :  { %197 = vmatmul.mubr.f32.gmra.mxu0 %v53_v7  ;;  %217 = vmatmul.mubr.f32.gmra.mxu1 %v383_v4 }
  0x38   :  { %201 = vmatprep.mubr.f32.mxu0 %v56_v13  ;;  %221 = vmatprep.mubr.f32.mxu1 %v373_v1  ;;  %v116_v1 = vld [vmem:[#allocation5 + $0x10] sm:$0xff] }
  0x3b   :  { %202 = vmatmul.mubr.f32.gmra.mxu0 %v55_v15  ;;  %222 = vmatmul.mubr.f32.gmra.mxu1 %v375_v2  ;;  %v120_v2 = vld [vmem:[#allocation5 + $0x30] sm:$0xff] }
  0x9f   :  { %v81_v27 = vpop.xlane.xlu1 %80  ;;  %v75_v28 = vpop.xlane.xlu0 %74 }
  0xa0   :  { %v99_v29 = vadd.f32 %v81_v27, %v67_v25  ;;  %v97_v30 = vadd.f32 %v75_v28, %v65_v26 }
  0xa2   :  { %108 = vst.msk [vmem:[%s505_s1 + $0x10] sm:$0xff] %vm31_vm1, %v99_v29  ;;  %106 = vst.msk [vmem:[%s505_s1] sm:$0xff] %vm31_vm1, %v97_v30 }
  0xa3   :  { %v84_v33 = vpop.xlane.xlu1 %83  ;;  %v78_v34 = vpop.xlane.xlu0 %77 }
  0xa4   :  { %v100_v35 = vadd.f32 %v84_v33, %v68_v31  ;;  %v98_v36 = vadd.f32 %v78_v34, %v66_v32 }
  0xa6   :  { %109 = vst.msk [vmem:[%s505_s1 + $0x18] sm:$0xff] %vm31_vm1, %v100_v35  ;;  %107 = vst.msk [vmem:[%s505_s1 + $0x8] sm:$0xff] %vm31_vm1, %v98_v36 }
  0xa7   :  { %v90_v39 = vpop.xlane.xlu1 %89  ;;  %v87_v40 = vpop.xlane.xlu0 %86 }
  0xa8   :  { %v102_v41 = vadd.f32 %v90_v39, %v70_v37  ;;  %v101_v42 = vadd.f32 %v87_v40, %v69_v38 }
  0xaa   :  { %111 = vst.msk [vmem:[%s505_s1 + $0x28] sm:$0xff] %vm31_vm1, %v102_v41  ;;  %110 = vst.msk [vmem:[%s505_s1 + $0x20] sm:$0xff] %vm31_vm1, %v101_v42 }
  0xab   :  { %v96_v45 = vpop.xlane.xlu1 %95  ;;  %v93_v46 = vpop.xlane.xlu0 %92 }
  0xac   :  { %v104_v47 = vadd.f32 %v96_v45, %v72_v43  ;;  %v103_v48 = vadd.f32 %v93_v46, %v71_v44 }
  0xae   :  { %113 = vst.msk [vmem:[%s505_s1 + $0x38] sm:$0xff] %vm31_vm1, %v104_v47  ;;  %112 = vst.msk [vmem:[%s505_s1 + $0x30] sm:$0xff] %vm31_vm1, %v103_v48  ;;  %s336_s1 = smov [#allocation5]  }
  0xaf   :  { %s251_s6 = sshll.u32 %s336_s1, 4  ;;  %s252_s6 = int_to_ptr.vmem [resolvable:$true] %s251_s6 }
  0xb0   :  { %s308_s7 = scalar_lea.vmem %s252_s6, 1024  ;;  %p313_p6 = scmp.lt.s32.totalorder %s252_s6, %s252_s6 }
  0xb1   :  { %p309_p5 = scmp.ne.s32.totalorder %s252_s6, %s308_s7  ;;  %p314_p7 = scmp.lt.s32.totalorder %s308_s7, %s308_s7 }
  0xb3   :  { %p315_p8 = por %p314_p7, %p313_p6 }
  0xb5   :  { %p316_p9 = pnand %p315_p8, %p309_p5 }
  0xef   :  { %v188_v51 = vpop.f32.mrf.mxu0  ;;  %v208_v52 = vpop.f32.mrf.mxu1 }
  0xf0   :  { %v227_v53 = vadd.f32 %v188_v51, %v114_v49  ;;  %v231_v54 = vadd.f32 %v208_v52, %v118_v50 }
  0xf1   :  { %v190_v55 = vpop.f32.mrf.mxu0  ;;  %v210_v56 = vpop.f32.mrf.mxu1 }
  0xf2   :  { %236 = vst.msk [vmem:[#allocation5] sm:$0xff] %vm40_vm0, %v227_v53  ;;  %240 = vst.msk [vmem:[#allocation5 + $0x20] sm:$0xff] %vm40_vm0, %v231_v54 }
  0xf3   :  { %v193_v59 = vpop.f32.mrf.mxu0  ;;  %v213_v60 = vpop.f32.mrf.mxu1 }
  0xf4   :  { %v228_v61 = vadd.f32 %v193_v59, %v115_v57  ;;  %v232_v62 = vadd.f32 %v213_v60, %v119_v58 }
  0xf5   :  { %v195_v63 = vpop.f32.mrf.mxu0  ;;  %v215_v0 = vpop.f32.mrf.mxu1 }
  0xf6   :  { %237 = vst.msk [vmem:[#allocation5 + $0x8] sm:$0xff] %vm40_vm0, %v228_v61  ;;  %241 = vst.msk [vmem:[#allocation5 + $0x28] sm:$0xff] %vm40_vm0, %v232_v62 }
  0xf7   :  { %v198_v3 = vpop.f32.mrf.mxu0  ;;  %v218_v4 = vpop.f32.mrf.mxu1 }
  0xf8   :  { %v229_v5 = vadd.f32 %v198_v3, %v116_v1  ;;  %v233_v6 = vadd.f32 %v218_v4, %v120_v2 }
  0xf9   :  { %v200_v7 = vpop.f32.mrf.mxu0  ;;  %v220_v8 = vpop.f32.mrf.mxu1 }
  0xfa   :  { %238 = vst.msk [vmem:[#allocation5 + $0x10] sm:$0xff] %vm40_vm0, %v229_v5  ;;  %242 = vst.msk [vmem:[#allocation5 + $0x30] sm:$0xff] %vm40_vm0, %v233_v6 }
  0xfb   :  { %v203_v11 = vpop.f32.mrf.mxu0  ;;  %v223_v12 = vpop.f32.mrf.mxu1 }
  0xfc   :  { %v230_v13 = vadd.f32 %v203_v11, %v117_v9  ;;  %v234_v14 = vadd.f32 %v223_v12, %v121_v10 }
  0xfd   :  { %v205_v15 = vpop.f32.mrf.mxu0  ;;  %v225_v16 = vpop.f32.mrf.mxu1 }
  0xfe   :  { %239 = vst.msk [vmem:[#allocation5 + $0x18] sm:$0xff] %vm40_vm0, %v230_v13  ;;  %243 = vst.msk [vmem:[#allocation5 + $0x38] sm:$0xff] %vm40_vm0, %v234_v14 }
  0xff   :  { %319 = shalt.err (!%p316_p9)
}
 0x100   :  { %s337_s8 = smov 128   ;;  %s338_s9 = smov 8  }
 0x101   :  { %257 = dma.vmem_to_hbm [thread:$0]  %s252_s6, 1024, %s506_s2, [#allocation4], %s337_s8, %s337_s8, %s338_s9  }
 0x102   :  { %330 = dma.done.wait [#allocation4], 1024  }
 0x103   :  { %331 = vsyncadd [#allocation4], 4294966272 }
 0x104   :  { %263 = vsyncpa [#allocation3], 1 }
 0x105   :  { %264 = vsyncpa [#allocation4], 1 }

</bundles_post_ra>
